<compile_context>
chip_gen: v6e
topology: v6e:2x2x1
jax: 0.10.0
libtpu: 0.0.40
codegen_flags: <defaults>
</compile_context>

<pallas_src>
import functools

import jax
import jax.numpy as jnp
from jax.experimental import pallas as pl
from jax.experimental.pallas import tpu as pltpu

LANE = 128     # vreg lane width: hidden feature dims padded to this
SUBLANE = 8    # f32 sublane granularity (rows per vreg)


def _round_up(n, m):
    return ((n + m - 1) // m) * m


def _sublane_rows(dtype):
    """Packed sublane granularity for a storage dtype (8 f32, 16 bf16, 32 int8)."""
    itemsize = jnp.dtype(dtype).itemsize
    return (4 // itemsize) * SUBLANE


# --------------------------------------------------------------------------- #
# Kernel
# --------------------------------------------------------------------------- #
def mlp_kernel(x_ref, *refs):
    """All 5 layers fused on one (tile_b, in_features) activation tile.

    refs = (w1, b1, ..., w5, b5, out).  Weights are VMEM-resident (constant
    index_map).  Matmuls accumulate in f32 via preferred_element_type regardless
    of the storage dtype of x / W (f32 or bf16); biases are f32.
    """
    o_ref = refs[-1]
    wb_refs = refs[:-1]
    n_layers = len(wb_refs) // 2

    h = x_ref[...]
    for layer in range(n_layers):
        w_ref = wb_refs[2 * layer]
        b_ref = wb_refs[2 * layer + 1]
        acc = jnp.dot(h.astype(w_ref.dtype), w_ref[...],
                      preferred_element_type=jnp.float32)
        acc = acc + b_ref[...]
        h = jnp.maximum(acc, 0.0) if layer < n_layers - 1 else acc
    o_ref[...] = h.astype(o_ref.dtype)


# --------------------------------------------------------------------------- #
# Parameter prep (done ONCE, outside the per-call forward)
# --------------------------------------------------------------------------- #
def prepare_params(params, compute_dtype=jnp.bfloat16):
    """Pad hidden dims to 128 lanes and cast weights to `compute_dtype`.

    The first layer keeps its natural input width (matches x) and the last
    layer keeps its natural output width (matches the kernel's output block),
    so x / out never need lane padding.  Biases stay f32.
    Returns a flat tuple (w1, b1, ..., w5, b5).
    """
    n = len(params)
    flat = []
    for idx, (w, b) in enumerate(params):
        fi, fo = w.shape
        fi_p = fi if idx == 0 else _round_up(fi, LANE)
        fo_p = fo if idx == n - 1 else _round_up(fo, LANE)
        w_p = jnp.zeros((fi_p, fo_p), compute_dtype)
        w_p = w_p.at[:fi, :fo].set(w.astype(compute_dtype))
        b_p = jnp.zeros((1, fo_p), jnp.float32)
        b_p = b_p.at[:, :fo].set(jnp.reshape(b, (1, -1)).astype(jnp.float32))
        flat += [w_p, b_p]
    return tuple(flat)


# --------------------------------------------------------------------------- #
# Forward
# --------------------------------------------------------------------------- #
def _resident_spec(shape, weight_buffers):
    """Constant index_map -> fetched once, stays VMEM-resident across the grid."""
    if weight_buffers == 1:
        # Single buffer: block never changes, default double-buffer is VMEM waste.
        return pl.BlockSpec(shape, lambda i: (0, 0),
                            pipeline_mode=pl.Buffered(buffer_count=1))
    return pl.BlockSpec(shape, lambda i: (0, 0))


@functools.partial(jax.jit, static_argnums=(2, 3))
def _mlp_forward_impl(x, flat_params, tile_b, weight_buffers):
    batch, in_features = x.shape
    assert flat_params[0].shape[0] == in_features, "x / w1 feature mismatch"
    compute_dtype = flat_params[0].dtype
    out_features = flat_params[-2].shape[1]

    # Megacore-aware batch tile: aim for >= 2 grid steps when batch allows
    # (v7x has 2 TensorCores), capped at tile_b, rounded to packed sublanes.
    sub = _sublane_rows(compute_dtype)
    tb = min(int(tile_b), _round_up(pl.cdiv(batch, 2), sub))
    tb = max(sub, _round_up(tb, sub))
    tb = min(tb, _round_up(batch, sub))
    grid = (pl.cdiv(batch, tb),)   # ragged last block is masked by Pallas

    x_c = x.astype(compute_dtype)

    in_specs = [pl.BlockSpec((tb, in_features), lambda i: (i, 0))]
    for a in flat_params:
        in_specs.append(_resident_spec(a.shape, weight_buffers))
    out_spec = pl.BlockSpec((tb, out_features), lambda i: (i, 0))

    return pl.pallas_call(
        mlp_kernel,
        out_shape=jax.ShapeDtypeStruct((batch, out_features), jnp.float32),
        grid=grid,
        in_specs=in_specs,
        out_specs=out_spec,
        compiler_params=pltpu.CompilerParams(
            # Batch axis is embarrassingly parallel (sharded across both TCs on
            # v7x; no-op on v5e/v6e).
            dimension_semantics=("parallel",),
        ),
    )(x_c, *flat_params)


# Resolved lazily on the first forward: 1 if pl.Buffered(1) (single-buffered
# resident weights) lowers on this jax/libtpu, else 0 = Pallas default buffering.
_WEIGHT_BUFFERS = None


def mlp_forward(x, flat_params, *, tile_b=1024):
    """x: (B, input_size); flat_params: output of prepare_params()."""
    global _WEIGHT_BUFFERS
    if _WEIGHT_BUFFERS is None:
        try:
            out = jax.block_until_ready(_mlp_forward_impl(x, flat_params, tile_b, 1))
            _WEIGHT_BUFFERS = 1
            return out
        except Exception:
            # pipeline_mode=pl.Buffered(1) not supported here -> default buffers.
            _WEIGHT_BUFFERS = 0
    return _mlp_forward_impl(x, flat_params, tile_b, _WEIGHT_BUFFERS)


# --------------------------------------------------------------------------- #
# Init + self-test
# --------------------------------------------------------------------------- #
def init_linear(key, fan_in, fan_out):
    # PyTorch nn.Linear default init: U(-1/sqrt(fan_in), 1/sqrt(fan_in)).
    kw, kb = jax.random.split(key)
    bound = 1.0 / jnp.sqrt(float(fan_in))
    w = jax.random.uniform(kw, (fan_in, fan_out), jnp.float32, -bound, bound)
    b = jax.random.uniform(kb, (1, fan_out), jnp.float32, -bound, bound)
    return w, b


if __name__ == "__main__":
    input_size = 10
    output_size = 2
    batch = 2

    key = jax.random.PRNGKey(0)
    keys = jax.random.split(key, 6)

    # Layer sizes from MLPNetwork.__init__: 10 -> 4 -> 8 -> 16 -> 4 -> 2
    dims = [(input_size, 4), (4, 8), (8, 16), (16, 4), (4, output_size)]
    params = [init_linear(keys[i], fi, fo) for i, (fi, fo) in enumerate(dims)]

    x = jax.random.normal(keys[5], (batch, input_size), jnp.float32)

    # Plain-JAX reference (same math as the PyTorch forward).
    ref = x
    for i, (w, b) in enumerate(params):
        ref = ref @ w + b
        if i < len(params) - 1:
            ref = jnp.maximum(ref, 0.0)

    # f32 storage path: exact match to reference.
    p_f32 = prepare_params(params, compute_dtype=jnp.float32)
    out = jax.block_until_ready(mlp_forward(x, p_f32))
    assert out.shape == (batch, output_size)
    assert jnp.allclose(out, ref, atol=1e-5, rtol=1e-5)

    # bf16 storage path (default; MXU-native on v6e/v7x), f32 accumulation.
    p_bf16 = prepare_params(params)
    out_bf16 = jax.block_until_ready(mlp_forward(x, p_bf16))
    assert out_bf16.shape == (batch, output_size)
    assert jnp.allclose(out_bf16, ref, atol=5e-2, rtol=5e-2)

    print("KERNEL_OK")
</pallas_src>

<mosaic_0001>
module attributes {stable_mosaic.version = 11 : i64} {
  func.func @mlp_kernel(%arg0: i32, %arg1: memref<8x10xf32, #tpu.memory_space<vmem>>, %arg2: memref<10x128xf32, #tpu.memory_space<vmem>>, %arg3: memref<1x128xf32, #tpu.memory_space<vmem>>, %arg4: memref<128x128xf32, #tpu.memory_space<vmem>>, %arg5: memref<1x128xf32, #tpu.memory_space<vmem>>, %arg6: memref<128x128xf32, #tpu.memory_space<vmem>>, %arg7: memref<1x128xf32, #tpu.memory_space<vmem>>, %arg8: memref<128x128xf32, #tpu.memory_space<vmem>>, %arg9: memref<1x128xf32, #tpu.memory_space<vmem>>, %arg10: memref<128x2xf32, #tpu.memory_space<vmem>>, %arg11: memref<1x2xf32, #tpu.memory_space<vmem>>, %arg12: memref<8x2xf32, #tpu.memory_space<vmem>>) attributes {dimension_semantics = [#tpu.dimension_semantics<parallel>], iteration_bounds = array<i64: 1>, scalar_prefetch = 0 : i64, scratch_operands = 0 : i64, tpu.core_type = #tpu.core_type<tc>, window_params = [{transform_indices = @transform_0, window_bounds = array<i64: 8, 10>}, {pipeline_mode = #tpu.pipeline_mode<synchronous>, transform_indices = @transform_1, window_bounds = array<i64: 10, 128>}, {pipeline_mode = #tpu.pipeline_mode<synchronous>, transform_indices = @transform_2, window_bounds = array<i64: 1, 128>}, {pipeline_mode = #tpu.pipeline_mode<synchronous>, transform_indices = @transform_3, window_bounds = array<i64: 128, 128>}, {pipeline_mode = #tpu.pipeline_mode<synchronous>, transform_indices = @transform_4, window_bounds = array<i64: 1, 128>}, {pipeline_mode = #tpu.pipeline_mode<synchronous>, transform_indices = @transform_5, window_bounds = array<i64: 128, 128>}, {pipeline_mode = #tpu.pipeline_mode<synchronous>, transform_indices = @transform_6, window_bounds = array<i64: 1, 128>}, {pipeline_mode = #tpu.pipeline_mode<synchronous>, transform_indices = @transform_7, window_bounds = array<i64: 128, 128>}, {pipeline_mode = #tpu.pipeline_mode<synchronous>, transform_indices = @transform_8, window_bounds = array<i64: 1, 128>}, {pipeline_mode = #tpu.pipeline_mode<synchronous>, transform_indices = @transform_9, window_bounds = array<i64: 128, 2>}, {pipeline_mode = #tpu.pipeline_mode<synchronous>, transform_indices = @transform_10, window_bounds = array<i64: 1, 2>}, {transform_indices = @transform_11, window_bounds = array<i64: 8, 2>}]} {
    %c0 = arith.constant 0 : index
    %c0_0 = arith.constant 0 : index
    %0 = vector.load %arg1[%c0, %c0_0] : memref<8x10xf32, #tpu.memory_space<vmem>>, vector<8x10xf32>
    %c0_1 = arith.constant 0 : index
    %c0_2 = arith.constant 0 : index
    %1 = vector.load %arg2[%c0_1, %c0_2] : memref<10x128xf32, #tpu.memory_space<vmem>>, vector<10x128xf32>
    %cst = arith.constant dense<0.000000e+00> : vector<8x128xf32>
    %2 = tpu.matmul %0, %1, %cst {dimension_numbers = #tpu.dot_dimension_numbers<[1], [0], [0], [1], [0, 0, 1, 1], [], []>} : vector<8x10xf32>, vector<10x128xf32>, vector<8x128xf32> -> vector<8x128xf32>
    %c0_3 = arith.constant 0 : index
    %c0_4 = arith.constant 0 : index
    %3 = vector.load %arg3[%c0_3, %c0_4] : memref<1x128xf32, #tpu.memory_space<vmem>>, vector<1x128xf32>
    %4 = vector.broadcast %3 : vector<1x128xf32> to vector<8x128xf32>
    %5 = arith.addf %2, %4 : vector<8x128xf32>
    %cst_5 = arith.constant 0.000000e+00 : f32
    %6 = vector.broadcast %cst_5 : f32 to vector<8x128xf32>
    %7 = arith.maximumf %5, %6 : vector<8x128xf32>
    %c0_6 = arith.constant 0 : index
    %c0_7 = arith.constant 0 : index
    %8 = vector.load %arg4[%c0_6, %c0_7] : memref<128x128xf32, #tpu.memory_space<vmem>>, vector<128x128xf32>
    %cst_8 = arith.constant dense<0.000000e+00> : vector<8x128xf32>
    %9 = tpu.matmul %7, %8, %cst_8 {dimension_numbers = #tpu.dot_dimension_numbers<[1], [0], [0], [1], [0, 0, 1, 1], [], []>} : vector<8x128xf32>, vector<128x128xf32>, vector<8x128xf32> -> vector<8x128xf32>
    %c0_9 = arith.constant 0 : index
    %c0_10 = arith.constant 0 : index
    %10 = vector.load %arg5[%c0_9, %c0_10] : memref<1x128xf32, #tpu.memory_space<vmem>>, vector<1x128xf32>
    %11 = vector.broadcast %10 : vector<1x128xf32> to vector<8x128xf32>
    %12 = arith.addf %9, %11 : vector<8x128xf32>
    %cst_11 = arith.constant 0.000000e+00 : f32
    %13 = vector.broadcast %cst_11 : f32 to vector<8x128xf32>
    %14 = arith.maximumf %12, %13 : vector<8x128xf32>
    %c0_12 = arith.constant 0 : index
    %c0_13 = arith.constant 0 : index
    %15 = vector.load %arg6[%c0_12, %c0_13] : memref<128x128xf32, #tpu.memory_space<vmem>>, vector<128x128xf32>
    %cst_14 = arith.constant dense<0.000000e+00> : vector<8x128xf32>
    %16 = tpu.matmul %14, %15, %cst_14 {dimension_numbers = #tpu.dot_dimension_numbers<[1], [0], [0], [1], [0, 0, 1, 1], [], []>} : vector<8x128xf32>, vector<128x128xf32>, vector<8x128xf32> -> vector<8x128xf32>
    %c0_15 = arith.constant 0 : index
    %c0_16 = arith.constant 0 : index
    %17 = vector.load %arg7[%c0_15, %c0_16] : memref<1x128xf32, #tpu.memory_space<vmem>>, vector<1x128xf32>
    %18 = vector.broadcast %17 : vector<1x128xf32> to vector<8x128xf32>
    %19 = arith.addf %16, %18 : vector<8x128xf32>
    %cst_17 = arith.constant 0.000000e+00 : f32
    %20 = vector.broadcast %cst_17 : f32 to vector<8x128xf32>
    %21 = arith.maximumf %19, %20 : vector<8x128xf32>
    %c0_18 = arith.constant 0 : index
    %c0_19 = arith.constant 0 : index
    %22 = vector.load %arg8[%c0_18, %c0_19] : memref<128x128xf32, #tpu.memory_space<vmem>>, vector<128x128xf32>
    %cst_20 = arith.constant dense<0.000000e+00> : vector<8x128xf32>
    %23 = tpu.matmul %21, %22, %cst_20 {dimension_numbers = #tpu.dot_dimension_numbers<[1], [0], [0], [1], [0, 0, 1, 1], [], []>} : vector<8x128xf32>, vector<128x128xf32>, vector<8x128xf32> -> vector<8x128xf32>
    %c0_21 = arith.constant 0 : index
    %c0_22 = arith.constant 0 : index
    %24 = vector.load %arg9[%c0_21, %c0_22] : memref<1x128xf32, #tpu.memory_space<vmem>>, vector<1x128xf32>
    %25 = vector.broadcast %24 : vector<1x128xf32> to vector<8x128xf32>
    %26 = arith.addf %23, %25 : vector<8x128xf32>
    %cst_23 = arith.constant 0.000000e+00 : f32
    %27 = vector.broadcast %cst_23 : f32 to vector<8x128xf32>
    %28 = arith.maximumf %26, %27 : vector<8x128xf32>
    %c0_24 = arith.constant 0 : index
    %c0_25 = arith.constant 0 : index
    %29 = vector.load %arg10[%c0_24, %c0_25] : memref<128x2xf32, #tpu.memory_space<vmem>>, vector<128x2xf32>
    %cst_26 = arith.constant dense<0.000000e+00> : vector<8x2xf32>
    %30 = tpu.matmul %28, %29, %cst_26 {dimension_numbers = #tpu.dot_dimension_numbers<[1], [0], [0], [1], [0, 0, 1, 1], [], []>} : vector<8x128xf32>, vector<128x2xf32>, vector<8x2xf32> -> vector<8x2xf32>
    %c0_27 = arith.constant 0 : index
    %c0_28 = arith.constant 0 : index
    %31 = vector.load %arg11[%c0_27, %c0_28] : memref<1x2xf32, #tpu.memory_space<vmem>>, vector<1x2xf32>
    %32 = vector.broadcast %31 : vector<1x2xf32> to vector<8x2xf32>
    %33 = arith.addf %30, %32 : vector<8x2xf32>
    %c0_29 = arith.constant 0 : index
    %c0_30 = arith.constant 0 : index
    %34 = vector.load %arg12[%c0_29, %c0_30] : memref<8x2xf32, #tpu.memory_space<vmem>>, vector<8x2xf32>
    tpu.vector_store %arg12[%c0_29, %c0_30], %33 {strides = array<i32>} : memref<8x2xf32, #tpu.memory_space<vmem>>, vector<8x2xf32>,
    return
  }
  func.func @transform_0(%arg0: i32) -> (i32, i32) {
    %c0_i32 = arith.constant 0 : i32
    %c0_i32_0 = arith.constant 0 : i32
    return %arg0, %c0_i32 : i32, i32
  }
  func.func @transform_1(%arg0: i32) -> (i32, i32) {
    %c0_i32 = arith.constant 0 : i32
    %c0_i32_0 = arith.constant 0 : i32
    %c0_i32_1 = arith.constant 0 : i32
    return %c0_i32, %c0_i32_0 : i32, i32
  }
  func.func @transform_2(%arg0: i32) -> (i32, i32) {
    %c0_i32 = arith.constant 0 : i32
    %c0_i32_0 = arith.constant 0 : i32
    %c0_i32_1 = arith.constant 0 : i32
    return %c0_i32, %c0_i32_0 : i32, i32
  }
  func.func @transform_3(%arg0: i32) -> (i32, i32) {
    %c0_i32 = arith.constant 0 : i32
    %c0_i32_0 = arith.constant 0 : i32
    %c0_i32_1 = arith.constant 0 : i32
    return %c0_i32, %c0_i32_0 : i32, i32
  }
  func.func @transform_4(%arg0: i32) -> (i32, i32) {
    %c0_i32 = arith.constant 0 : i32
    %c0_i32_0 = arith.constant 0 : i32
    %c0_i32_1 = arith.constant 0 : i32
    return %c0_i32, %c0_i32_0 : i32, i32
  }
  func.func @transform_5(%arg0: i32) -> (i32, i32) {
    %c0_i32 = arith.constant 0 : i32
    %c0_i32_0 = arith.constant 0 : i32
    %c0_i32_1 = arith.constant 0 : i32
    return %c0_i32, %c0_i32_0 : i32, i32
  }
  func.func @transform_6(%arg0: i32) -> (i32, i32) {
    %c0_i32 = arith.constant 0 : i32
    %c0_i32_0 = arith.constant 0 : i32
    %c0_i32_1 = arith.constant 0 : i32
    return %c0_i32, %c0_i32_0 : i32, i32
  }
  func.func @transform_7(%arg0: i32) -> (i32, i32) {
    %c0_i32 = arith.constant 0 : i32
    %c0_i32_0 = arith.constant 0 : i32
    %c0_i32_1 = arith.constant 0 : i32
    return %c0_i32, %c0_i32_0 : i32, i32
  }
  func.func @transform_8(%arg0: i32) -> (i32, i32) {
    %c0_i32 = arith.constant 0 : i32
    %c0_i32_0 = arith.constant 0 : i32
    %c0_i32_1 = arith.constant 0 : i32
    return %c0_i32, %c0_i32_0 : i32, i32
  }
  func.func @transform_9(%arg0: i32) -> (i32, i32) {
    %c0_i32 = arith.constant 0 : i32
    %c0_i32_0 = arith.constant 0 : i32
    %c0_i32_1 = arith.constant 0 : i32
    return %c0_i32, %c0_i32_0 : i32, i32
  }
  func.func @transform_10(%arg0: i32) -> (i32, i32) {
    %c0_i32 = arith.constant 0 : i32
    %c0_i32_0 = arith.constant 0 : i32
    %c0_i32_1 = arith.constant 0 : i32
    return %c0_i32, %c0_i32_0 : i32, i32
  }
  func.func @transform_11(%arg0: i32) -> (i32, i32) {
    %c0_i32 = arith.constant 0 : i32
    %c0_i32_0 = arith.constant 0 : i32
    return %arg0, %c0_i32 : i32, i32
  }
}

module attributes {stable_mosaic.version = 11 : i64} {
  func.func @mlp_kernel(%arg0: i32, %arg1: memref<8x10xf32, #tpu.memory_space<vmem>>, %arg2: memref<10x128xf32, #tpu.memory_space<vmem>>, %arg3: memref<1x128xf32, #tpu.memory_space<vmem>>, %arg4: memref<128x128xf32, #tpu.memory_space<vmem>>, %arg5: memref<1x128xf32, #tpu.memory_space<vmem>>, %arg6: memref<128x128xf32, #tpu.memory_space<vmem>>, %arg7: memref<1x128xf32, #tpu.memory_space<vmem>>, %arg8: memref<128x128xf32, #tpu.memory_space<vmem>>, %arg9: memref<1x128xf32, #tpu.memory_space<vmem>>, %arg10: memref<128x2xf32, #tpu.memory_space<vmem>>, %arg11: memref<1x2xf32, #tpu.memory_space<vmem>>, %arg12: memref<8x2xf32, #tpu.memory_space<vmem>>) attributes {dimension_semantics = [#tpu.dimension_semantics<parallel>], iteration_bounds = array<i64: 1>, scalar_prefetch = 0 : i64, scratch_operands = 0 : i64, tpu.core_type = #tpu.core_type<tc>, window_params = [{transform_indices = @transform_0, window_bounds = array<i64: 8, 10>}, {pipeline_mode = #tpu.pipeline_mode<synchronous>, transform_indices = @transform_1, window_bounds = array<i64: 10, 128>}, {pipeline_mode = #tpu.pipeline_mode<synchronous>, transform_indices = @transform_2, window_bounds = array<i64: 1, 128>}, {pipeline_mode = #tpu.pipeline_mode<synchronous>, transform_indices = @transform_3, window_bounds = array<i64: 128, 128>}, {pipeline_mode = #tpu.pipeline_mode<synchronous>, transform_indices = @transform_4, window_bounds = array<i64: 1, 128>}, {pipeline_mode = #tpu.pipeline_mode<synchronous>, transform_indices = @transform_5, window_bounds = array<i64: 128, 128>}, {pipeline_mode = #tpu.pipeline_mode<synchronous>, transform_indices = @transform_6, window_bounds = array<i64: 1, 128>}, {pipeline_mode = #tpu.pipeline_mode<synchronous>, transform_indices = @transform_7, window_bounds = array<i64: 128, 128>}, {pipeline_mode = #tpu.pipeline_mode<synchronous>, transform_indices = @transform_8, window_bounds = array<i64: 1, 128>}, {pipeline_mode = #tpu.pipeline_mode<synchronous>, transform_indices = @transform_9, window_bounds = array<i64: 128, 2>}, {pipeline_mode = #tpu.pipeline_mode<synchronous>, transform_indices = @transform_10, window_bounds = array<i64: 1, 2>}, {transform_indices = @transform_11, window_bounds = array<i64: 8, 2>}]} {
    %c0 = arith.constant 0 : index
    %c0_0 = arith.constant 0 : index
    %0 = vector.load %arg1[%c0, %c0_0] : memref<8x10xf32, #tpu.memory_space<vmem>>, vector<8x10xf32>
    %c0_1 = arith.constant 0 : index
    %c0_2 = arith.constant 0 : index
    %1 = vector.load %arg2[%c0_1, %c0_2] : memref<10x128xf32, #tpu.memory_space<vmem>>, vector<10x128xf32>
    %cst = arith.constant dense<0.000000e+00> : vector<8x128xf32>
    %2 = tpu.matmul %0, %1, %cst {dimension_numbers = #tpu.dot_dimension_numbers<[1], [0], [0], [1], [0, 0, 1, 1], [], []>} : vector<8x10xf32>, vector<10x128xf32>, vector<8x128xf32> -> vector<8x128xf32>
    %c0_3 = arith.constant 0 : index
    %c0_4 = arith.constant 0 : index
    %3 = vector.load %arg3[%c0_3, %c0_4] : memref<1x128xf32, #tpu.memory_space<vmem>>, vector<1x128xf32>
    %4 = vector.broadcast %3 : vector<1x128xf32> to vector<8x128xf32>
    %5 = arith.addf %2, %4 : vector<8x128xf32>
    %cst_5 = arith.constant 0.000000e+00 : f32
    %6 = vector.broadcast %cst_5 : f32 to vector<8x128xf32>
    %7 = arith.maximumf %5, %6 : vector<8x128xf32>
    %c0_6 = arith.constant 0 : index
    %c0_7 = arith.constant 0 : index
    %8 = vector.load %arg4[%c0_6, %c0_7] : memref<128x128xf32, #tpu.memory_space<vmem>>, vector<128x128xf32>
    %cst_8 = arith.constant dense<0.000000e+00> : vector<8x128xf32>
    %9 = tpu.matmul %7, %8, %cst_8 {dimension_numbers = #tpu.dot_dimension_numbers<[1], [0], [0], [1], [0, 0, 1, 1], [], []>} : vector<8x128xf32>, vector<128x128xf32>, vector<8x128xf32> -> vector<8x128xf32>
    %c0_9 = arith.constant 0 : index
    %c0_10 = arith.constant 0 : index
    %10 = vector.load %arg5[%c0_9, %c0_10] : memref<1x128xf32, #tpu.memory_space<vmem>>, vector<1x128xf32>
    %11 = vector.broadcast %10 : vector<1x128xf32> to vector<8x128xf32>
    %12 = arith.addf %9, %11 : vector<8x128xf32>
    %cst_11 = arith.constant 0.000000e+00 : f32
    %13 = vector.broadcast %cst_11 : f32 to vector<8x128xf32>
    %14 = arith.maximumf %12, %13 : vector<8x128xf32>
    %c0_12 = arith.constant 0 : index
    %c0_13 = arith.constant 0 : index
    %15 = vector.load %arg6[%c0_12, %c0_13] : memref<128x128xf32, #tpu.memory_space<vmem>>, vector<128x128xf32>
    %cst_14 = arith.constant dense<0.000000e+00> : vector<8x128xf32>
    %16 = tpu.matmul %14, %15, %cst_14 {dimension_numbers = #tpu.dot_dimension_numbers<[1], [0], [0], [1], [0, 0, 1, 1], [], []>} : vector<8x128xf32>, vector<128x128xf32>, vector<8x128xf32> -> vector<8x128xf32>
    %c0_15 = arith.constant 0 : index
    %c0_16 = arith.constant 0 : index
    %17 = vector.load %arg7[%c0_15, %c0_16] : memref<1x128xf32, #tpu.memory_space<vmem>>, vector<1x128xf32>
    %18 = vector.broadcast %17 : vector<1x128xf32> to vector<8x128xf32>
    %19 = arith.addf %16, %18 : vector<8x128xf32>
    %cst_17 = arith.constant 0.000000e+00 : f32
    %20 = vector.broadcast %cst_17 : f32 to vector<8x128xf32>
    %21 = arith.maximumf %19, %20 : vector<8x128xf32>
    %c0_18 = arith.constant 0 : index
    %c0_19 = arith.constant 0 : index
    %22 = vector.load %arg8[%c0_18, %c0_19] : memref<128x128xf32, #tpu.memory_space<vmem>>, vector<128x128xf32>
    %cst_20 = arith.constant dense<0.000000e+00> : vector<8x128xf32>
    %23 = tpu.matmul %21, %22, %cst_20 {dimension_numbers = #tpu.dot_dimension_numbers<[1], [0], [0], [1], [0, 0, 1, 1], [], []>} : vector<8x128xf32>, vector<128x128xf32>, vector<8x128xf32> -> vector<8x128xf32>
    %c0_21 = arith.constant 0 : index
    %c0_22 = arith.constant 0 : index
    %24 = vector.load %arg9[%c0_21, %c0_22] : memref<1x128xf32, #tpu.memory_space<vmem>>, vector<1x128xf32>
    %25 = vector.broadcast %24 : vector<1x128xf32> to vector<8x128xf32>
    %26 = arith.addf %23, %25 : vector<8x128xf32>
    %cst_23 = arith.constant 0.000000e+00 : f32
    %27 = vector.broadcast %cst_23 : f32 to vector<8x128xf32>
    %28 = arith.maximumf %26, %27 : vector<8x128xf32>
    %c0_24 = arith.constant 0 : index
    %c0_25 = arith.constant 0 : index
    %29 = vector.load %arg10[%c0_24, %c0_25] : memref<128x2xf32, #tpu.memory_space<vmem>>, vector<128x2xf32>
    %cst_26 = arith.constant dense<0.000000e+00> : vector<8x2xf32>
    %30 = tpu.matmul %28, %29, %cst_26 {dimension_numbers = #tpu.dot_dimension_numbers<[1], [0], [0], [1], [0, 0, 1, 1], [], []>} : vector<8x128xf32>, vector<128x2xf32>, vector<8x2xf32> -> vector<8x2xf32>
    %c0_27 = arith.constant 0 : index
    %c0_28 = arith.constant 0 : index
    %31 = vector.load %arg11[%c0_27, %c0_28] : memref<1x2xf32, #tpu.memory_space<vmem>>, vector<1x2xf32>
    %32 = vector.broadcast %31 : vector<1x2xf32> to vector<8x2xf32>
    %33 = arith.addf %30, %32 : vector<8x2xf32>
    %c0_29 = arith.constant 0 : index
    %c0_30 = arith.constant 0 : index
    %34 = vector.load %arg12[%c0_29, %c0_30] : memref<8x2xf32, #tpu.memory_space<vmem>>, vector<8x2xf32>
    tpu.vector_store %arg12[%c0_29, %c0_30], %33 {strides = array<i32>} : memref<8x2xf32, #tpu.memory_space<vmem>>, vector<8x2xf32>,
    return
  }
  func.func @transform_0(%arg0: i32) -> (i32, i32) {
    %c0_i32 = arith.constant 0 : i32
    %c0_i32_0 = arith.constant 0 : i32
    return %arg0, %c0_i32 : i32, i32
  }
  func.func @transform_1(%arg0: i32) -> (i32, i32) {
    %c0_i32 = arith.constant 0 : i32
    %c0_i32_0 = arith.constant 0 : i32
    %c0_i32_1 = arith.constant 0 : i32
    return %c0_i32, %c0_i32_0 : i32, i32
  }
  func.func @transform_2(%arg0: i32) -> (i32, i32) {
    %c0_i32 = arith.constant 0 : i32
    %c0_i32_0 = arith.constant 0 : i32
    %c0_i32_1 = arith.constant 0 : i32
    return %c0_i32, %c0_i32_0 : i32, i32
  }
  func.func @transform_3(%arg0: i32) -> (i32, i32) {
    %c0_i32 = arith.constant 0 : i32
    %c0_i32_0 = arith.constant 0 : i32
    %c0_i32_1 = arith.constant 0 : i32
    return %c0_i32, %c0_i32_0 : i32, i32
  }
  func.func @transform_4(%arg0: i32) -> (i32, i32) {
    %c0_i32 = arith.constant 0 : i32
    %c0_i32_0 = arith.constant 0 : i32
    %c0_i32_1 = arith.constant 0 : i32
    return %c0_i32, %c0_i32_0 : i32, i32
  }
  func.func @transform_5(%arg0: i32) -> (i32, i32) {
    %c0_i32 = arith.constant 0 : i32
    %c0_i32_0 = arith.constant 0 : i32
    %c0_i32_1 = arith.constant 0 : i32
    return %c0_i32, %c0_i32_0 : i32, i32
  }
  func.func @transform_6(%arg0: i32) -> (i32, i32) {
    %c0_i32 = arith.constant 0 : i32
    %c0_i32_0 = arith.constant 0 : i32
    %c0_i32_1 = arith.constant 0 : i32
    return %c0_i32, %c0_i32_0 : i32, i32
  }
  func.func @transform_7(%arg0: i32) -> (i32, i32) {
    %c0_i32 = arith.constant 0 : i32
    %c0_i32_0 = arith.constant 0 : i32
    %c0_i32_1 = arith.constant 0 : i32
    return %c0_i32, %c0_i32_0 : i32, i32
  }
  func.func @transform_8(%arg0: i32) -> (i32, i32) {
    %c0_i32 = arith.constant 0 : i32
    %c0_i32_0 = arith.constant 0 : i32
    %c0_i32_1 = arith.constant 0 : i32
    return %c0_i32, %c0_i32_0 : i32, i32
  }
  func.func @transform_9(%arg0: i32) -> (i32, i32) {
    %c0_i32 = arith.constant 0 : i32
    %c0_i32_0 = arith.constant 0 : i32
    %c0_i32_1 = arith.constant 0 : i32
    return %c0_i32, %c0_i32_0 : i32, i32
  }
  func.func @transform_10(%arg0: i32) -> (i32, i32) {
    %c0_i32 = arith.constant 0 : i32
    %c0_i32_0 = arith.constant 0 : i32
    %c0_i32_1 = arith.constant 0 : i32
    return %c0_i32, %c0_i32_0 : i32, i32
  }
  func.func @transform_11(%arg0: i32) -> (i32, i32) {
    %c0_i32 = arith.constant 0 : i32
    %c0_i32_0 = arith.constant 0 : i32
    return %arg0, %c0_i32 : i32, i32
  }
}

</mosaic_0001>

<bundles_post_ra>
// kernel: _mlp_forward_impl.1
= control target key start
LH: loop header
LB: loop body
LE: loop exit
PB: predicated region body
PF: predicated region fallthrough
CT: control target
= control target key end

     0   :  { %16 = vsyncpa [#allocation3], 0  ;;  %s1157_s0 = inlined_call_operand.vmem [shape: f32[2,10], index: 0, kind: input, shape index: {}]   ;;  %s1158_s1 = inlined_call_operand.hbm [shape: f32[10,128], index: 1, kind: input, shape index: {}]   ;;  %s1159_s2 = inlined_call_operand.vmem [shape: f32[1,128], index: 2, kind: input, shape index: {}]   ;;  %s1160_s3 = inlined_call_operand.vmem [shape: f32[128,128], index: 3, kind: input, shape index: {}]   ;;  %s1161_s4 = inlined_call_operand.vmem [shape: f32[1,128], index: 4, kind: input, shape index: {}]   ;;  %s1162_s5 = inlined_call_operand.hbm [shape: f32[128,128], index: 5, kind: input, shape index: {}]   ;;  %s1163_s6 = inlined_call_operand.vmem [shape: f32[1,128], index: 6, kind: input, shape index: {}]   ;;  %s1164_s7 = inlined_call_operand.hbm [shape: f32[128,128], index: 7, kind: input, shape index: {}]   ;;  %s1165_s8 = inlined_call_operand.vmem [shape: f32[1,128], index: 8, kind: input, shape index: {}]   ;;  %s1166_s9 = inlined_call_operand.vmem [shape: f32[128,2], index: 9, kind: input, shape index: {}]   ;;  %s1167_s10 = inlined_call_operand.vmem [shape: f32[1,2], index: 10, kind: input, shape index: {}]   ;;  %s1168_s11 = inlined_call_operand.hbm [shape: f32[2,2], index: 11, kind: output, shape index: {}]  }
   0x1   :  { %17 = vsyncpa [#allocation6], 0 }
   0x2   :  { %18 = vsyncpa [#allocation4], 0  ;;  %s885_s17 = smov [#allocation5]   ;;  %s886_s19 = smov [#allocation2]  }
   0x3   :  { %s44_s18 = sshll.u32 %s885_s17, 4  ;;  %s26_s20 = sshll.u32 %s886_s19, 4  ;;  %s45_s18 = int_to_ptr.vmem [resolvable:$true] %s44_s18  ;;  %s27_s20 = int_to_ptr.vmem [resolvable:$true] %s26_s20 }
   0x4   :  { %s807_s21 = scalar_lea.vmem %s45_s18, 2048  ;;  %p812_p1 = scmp.lt.s32.totalorder %s45_s18, %s45_s18 }
   0x5   :  { %p808_p0 = scmp.ne.s32.totalorder %s45_s18, %s807_s21  ;;  %p813_p2 = scmp.lt.s32.totalorder %s807_s21, %s807_s21 }
   0x7   :  { %p814_p3 = por %p813_p2, %p812_p1 }
   0x9   :  { %p815_p4 = pnand %p814_p3, %p808_p0 }
   0xb   :  { %818 = shalt.err (!%p815_p4)
}
   0xc   :  { %s887_s22 = smov 128   ;;  %s888_s23 = smov 8  }
   0xd   :  { %50 = dma.hbm_to_vmem [thread:$0]  %s1162_s5, 2048, %s45_s18, [#allocation6], %s887_s22, %s887_s22, %s888_s23  }
   0xe   :  { %s827_s26 = scalar_lea.vmem %s27_s20, 256  ;;  %p832_p6 = scmp.lt.s32.totalorder %s27_s20, %s27_s20 }
   0xf   :  { %p828_p5 = scmp.ne.s32.totalorder %s27_s20, %s827_s26  ;;  %p833_p7 = scmp.lt.s32.totalorder %s827_s26, %s827_s26 }
  0x11   :  { %p834_p8 = por %p833_p7, %p832_p6 }
  0x13   :  { %p835_p9 = pnand %p834_p8, %p828_p5 }
  0x15   :  { %838 = shalt.err (!%p835_p9)
}
  0x16   :  { %32 = dma.hbm_to_vmem [thread:$0]  %s1158_s1, 256, %s27_s20, [#allocation3], %s887_s22, %s887_s22, %s888_s23  }
  0x17   :  { %s889_s29 = smov [#allocation7]  }
  0x18   :  { %s58_s30 = sshll.u32 %s889_s29, 4  ;;  %s59_s30 = int_to_ptr.vmem [resolvable:$true] %s58_s30 }
  0x19   :  { %s847_s12 = scalar_lea.vmem %s59_s30, 2048  ;;  %p852_p11 = scmp.lt.s32.totalorder %s59_s30, %s59_s30 }
  0x1a   :  { %p848_p10 = scmp.ne.s32.totalorder %s59_s30, %s847_s12  ;;  %p853_p12 = scmp.lt.s32.totalorder %s847_s12, %s847_s12 }
  0x1c   :  { %p854_p13 = por %p853_p12, %p852_p11 }
  0x1e   :  { %p855_p0 = pnand %p854_p13, %p848_p10 }
  0x20   :  { %858 = shalt.err (!%p855_p0)
}
  0x21   :  { %64 = dma.hbm_to_vmem [thread:$0]  %s1164_s7, 2048, %s59_s30, [#allocation6], %s887_s22, %s887_s22, %s888_s23  }
  0x22   :  { %879 = dma.done.wait [#allocation3], 256  }
  0x23   :  { %880 = vsyncadd [#allocation3], 4294967040 }
  0x24   :  { %881 = dma.done.wait [#allocation6], 4096  }
  0x25   :  { %882 = vsyncadd [#allocation6], 4294963200  ;;  %v890_v0 = vmov 0.0   ;;  %vm891_vm0 = vmmov 0   ;;  %vm94_vm1 = vcmask 1041408   ;;  %v81_v2 = vld [vmem:[#allocation2] sm:$0xff] }
  0x26   :  { %642 = vmatprep.subr.mxu0 %v890_v0  ;;  %646 = vmatprep.mubr.msk.f32.mxu0 %vm891_vm0, %v890_v0  ;;  %v82_v1 = vld [vmem:[#allocation2 + $0x8] sm:$0x3]  ;;  %v80_v3 = vld [vmem:[%s1157_s0] sm:$0xff]  ;;  %vm90_vm2 = vcmask 80896   ;;  %v184_v4 = vld [vmem:[%s1160_s3 + $0x78] sm:$0xff]  ;;  %vm544_vm3 = vcmask 15360  }
  0x27   :  { %649 = vmatprep.subr.mxu1 %v890_v0  ;;  %681 = vmatprep.mubr.msk.f32.mxu1 %vm891_vm0, %v890_v0  ;;  %v183_v5 = vld [vmem:[%s1160_s3 + $0x70] sm:$0xff]  ;;  %v182_v6 = vld [vmem:[%s1160_s3 + $0x68] sm:$0xff]  ;;  %v181_v7 = vld [vmem:[%s1160_s3 + $0x60] sm:$0xff] }
  0x28   :  { %643 = vmatpush3.msk.msra.mxu0 %vm94_vm1, %v82_v1  ;;  %650 = vmatpush3.msra.mxu1 %v184_v4  ;;  %v180_v8 = vld [vmem:[%s1160_s3 + $0x58] sm:$0xff]  ;;  %v179_v9 = vld [vmem:[%s1160_s3 + $0x50] sm:$0xff]  ;;  %v178_v10 = vld [vmem:[%s1160_s3 + $0x48] sm:$0xff] }
  0x29   :  { %644 = vmatprep.subr.mxu0 %v890_v0  ;;  %651 = vmatprep.subr.mxu1 %v890_v0  ;;  %v177_v11 = vld [vmem:[%s1160_s3 + $0x40] sm:$0xff]  ;;  %v176_v12 = vld [vmem:[%s1160_s3 + $0x38] sm:$0xff]  ;;  %v175_v13 = vld [vmem:[%s1160_s3 + $0x30] sm:$0xff] }
  0x2a   :  { %645 = vmatpush3.msra.mxu0 %v81_v2  ;;  %652 = vmatpush3.msra.mxu1 %v183_v5  ;;  %v174_v14 = vld [vmem:[%s1160_s3 + $0x28] sm:$0xff]  ;;  %v173_v15 = vld [vmem:[%s1160_s3 + $0x20] sm:$0xff]  ;;  %v172_v16 = vld [vmem:[%s1160_s3 + $0x18] sm:$0xff] }
  0x2b   :  { %647 = vmatmul.mubr.msk.f32.vlgmr.msra.gmra.mxu0 %vm90_vm2, %v80_v3  ;;  %653 = vmatprep.subr.mxu1 %v890_v0  ;;  %v171_v17 = vld [vmem:[%s1160_s3 + $0x10] sm:$0xff]  ;;  %v170_v18 = vld [vmem:[%s1160_s3 + $0x8] sm:$0xff]  ;;  %v169_v19 = vld [vmem:[%s1160_s3] sm:$0xff] }
  0x2c   :  { %684 = vmatprep.subr.mxu0 %v890_v0  ;;  %654 = vmatpush3.msra.mxu1 %v182_v6  ;;  %v278_v20 = vld [vmem:[#allocation5 + $0x78] sm:$0xff]  ;;  %v277_v21 = vld [vmem:[#allocation5 + $0x70] sm:$0xff]  ;;  %v276_v22 = vld [vmem:[#allocation5 + $0x68] sm:$0xff] }
  0x2d   :  { %716 = vmatprep.mubr.msk.f32.mxu0 %vm891_vm0, %v890_v0  ;;  %655 = vmatprep.subr.mxu1 %v890_v0  ;;  %v275_v23 = vld [vmem:[#allocation5 + $0x60] sm:$0xff]  ;;  %v274_v24 = vld [vmem:[#allocation5 + $0x58] sm:$0xff]  ;;  %v273_v25 = vld [vmem:[#allocation5 + $0x50] sm:$0xff] }
  0x2e   :  { %656 = vmatpush3.msra.mxu1 %v181_v7  ;;  %685 = vmatpush3.msra.mxu0 %v278_v20  ;;  %v272_v26 = vld [vmem:[#allocation5 + $0x48] sm:$0xff]  ;;  %v271_v27 = vld [vmem:[#allocation5 + $0x40] sm:$0xff]  ;;  %v270_v28 = vld [vmem:[#allocation5 + $0x38] sm:$0xff] }
  0x2f   :  { %657 = vmatprep.subr.mxu1 %v890_v0  ;;  %686 = vmatprep.subr.mxu0 %v890_v0  ;;  %v269_v29 = vld [vmem:[#allocation5 + $0x30] sm:$0xff]  ;;  %v268_v30 = vld [vmem:[#allocation5 + $0x28] sm:$0xff]  ;;  %v267_v31 = vld [vmem:[#allocation5 + $0x20] sm:$0xff] }
  0x30   :  { %658 = vmatpush3.msra.mxu1 %v180_v8  ;;  %687 = vmatpush3.msra.mxu0 %v277_v21  ;;  %v266_v32 = vld [vmem:[#allocation5 + $0x18] sm:$0xff]  ;;  %v564_v33 = vld [vmem:[%s1159_s2] ss:$0 sm:$0xff]  ;;  %v264_v39 = vld [vmem:[#allocation5 + $0x8] sm:$0xff] }
  0x31   :  { %659 = vmatprep.subr.mxu1 %v890_v0  ;;  %688 = vmatprep.subr.mxu0 %v890_v0  ;;  %v265_v38 = vld [vmem:[#allocation5 + $0x10] sm:$0xff]  ;;  %v263_v40 = vld [vmem:[#allocation5] sm:$0xff]  ;;  %v372_v41 = vld [vmem:[#allocation7 + $0x78] sm:$0xff] }
  0x32   :  { %660 = vmatpush3.msra.mxu1 %v179_v9  ;;  %689 = vmatpush3.msra.mxu0 %v276_v22  ;;  %v371_v42 = vld [vmem:[#allocation7 + $0x70] sm:$0xff]  ;;  %v370_v43 = vld [vmem:[#allocation7 + $0x68] sm:$0xff]  ;;  %v369_v44 = vld [vmem:[#allocation7 + $0x60] sm:$0xff] }
  0x33   :  { %661 = vmatprep.subr.mxu1 %v890_v0  ;;  %690 = vmatprep.subr.mxu0 %v890_v0  ;;  %v368_v45 = vld [vmem:[#allocation7 + $0x58] sm:$0xff]  ;;  %v367_v46 = vld [vmem:[#allocation7 + $0x50] sm:$0xff]  ;;  %v366_v47 = vld [vmem:[#allocation7 + $0x48] sm:$0xff] }
  0x34   :  { %662 = vmatpush3.msra.mxu1 %v178_v10  ;;  %691 = vmatpush3.msra.mxu0 %v275_v23  ;;  %v365_v48 = vld [vmem:[#allocation7 + $0x40] sm:$0xff]  ;;  %v364_v49 = vld [vmem:[#allocation7 + $0x38] sm:$0xff]  ;;  %v363_v50 = vld [vmem:[#allocation7 + $0x30] sm:$0xff] }
  0x35   :  { %663 = vmatprep.subr.mxu1 %v890_v0  ;;  %692 = vmatprep.subr.mxu0 %v890_v0  ;;  %v362_v51 = vld [vmem:[#allocation7 + $0x28] sm:$0xff]  ;;  %v361_v52 = vld [vmem:[#allocation7 + $0x20] sm:$0xff]  ;;  %v360_v53 = vld [vmem:[#allocation7 + $0x18] sm:$0xff] }
  0x36   :  { %664 = vmatpush3.msra.mxu1 %v177_v11  ;;  %693 = vmatpush3.msra.mxu0 %v274_v24  ;;  %v567_v54 = vld [vmem:[%s1161_s4] ss:$0 sm:$0xff]  ;;  %v358_v60 = vld [vmem:[#allocation7 + $0x8] sm:$0xff]  ;;  %v357_v61 = vld [vmem:[#allocation7] sm:$0xff] }
  0x37   :  { %665 = vmatprep.subr.mxu1 %v890_v0  ;;  %694 = vmatprep.subr.mxu0 %v890_v0  ;;  %v359_v59 = vld [vmem:[#allocation7 + $0x10] sm:$0xff]  ;;  %v466_v62 = vld [vmem:[%s1166_s9 + $0x78] sm:$0xff]  ;;  %v465_v63 = vld [vmem:[%s1166_s9 + $0x70] sm:$0xff] }
  0x38   :  { %666 = vmatpush3.msra.mxu1 %v176_v12  ;;  %695 = vmatpush3.msra.mxu0 %v273_v25  ;;  %v464_v1 = vld [vmem:[%s1166_s9 + $0x68] sm:$0xff]  ;;  %v463_v2 = vld [vmem:[%s1166_s9 + $0x60] sm:$0xff]  ;;  %v462_v3 = vld [vmem:[%s1166_s9 + $0x58] sm:$0xff] }
  0x39   :  { %667 = vmatprep.subr.mxu1 %v890_v0  ;;  %696 = vmatprep.subr.mxu0 %v890_v0  ;;  %v461_v4 = vld [vmem:[%s1166_s9 + $0x50] sm:$0xff]  ;;  %v460_v5 = vld [vmem:[%s1166_s9 + $0x48] sm:$0xff]  ;;  %v459_v6 = vld [vmem:[%s1166_s9 + $0x40] sm:$0xff] }
  0x3a   :  { %668 = vmatpush3.msra.mxu1 %v175_v13  ;;  %697 = vmatpush3.msra.mxu0 %v272_v26  ;;  %v458_v7 = vld [vmem:[%s1166_s9 + $0x38] sm:$0xff]  ;;  %v457_v8 = vld [vmem:[%s1166_s9 + $0x30] sm:$0xff]  ;;  %v456_v9 = vld [vmem:[%s1166_s9 + $0x28] sm:$0xff] }
  0x3b   :  { %669 = vmatprep.subr.mxu1 %v890_v0  ;;  %698 = vmatprep.subr.mxu0 %v890_v0  ;;  %v455_v10 = vld [vmem:[%s1166_s9 + $0x20] sm:$0xff]  ;;  %v454_v11 = vld [vmem:[%s1166_s9 + $0x18] sm:$0xff] }
  0x3c   :  { %670 = vmatpush3.msra.mxu1 %v174_v14  ;;  %699 = vmatpush3.msra.mxu0 %v271_v27  ;;  %v568_v12 = vld [vmem:[%s1163_s6] ss:$0 sm:$0xff] }
  0x3d   :  { %671 = vmatprep.subr.mxu1 %v890_v0  ;;  %700 = vmatprep.subr.mxu0 %v890_v0  ;;  %v569_v20 = vld [vmem:[%s1165_s8] ss:$0 sm:$0xff] }
  0x3e   :  { %672 = vmatpush3.msra.mxu1 %v173_v15  ;;  %701 = vmatpush3.msra.mxu0 %v270_v28  ;;  %v570_v25 = vld [vmem:[%s1167_s10] ss:$0 sm:$0xff] }
  0x3f   :  { %673 = vmatprep.subr.mxu1 %v890_v0  ;;  %702 = vmatprep.subr.mxu0 %v890_v0 }
  0x40   :  { %674 = vmatpush3.msra.mxu1 %v172_v16  ;;  %703 = vmatpush3.msra.mxu0 %v269_v29 }
  0x41   :  { %675 = vmatprep.subr.mxu1 %v890_v0  ;;  %704 = vmatprep.subr.mxu0 %v890_v0 }
  0x42   :  { %676 = vmatpush3.msra.mxu1 %v171_v17  ;;  %705 = vmatpush3.msra.mxu0 %v268_v30  ;;  %v453_v17 = vld [vmem:[%s1166_s9 + $0x10] sm:$0xff] }
  0x43   :  { %677 = vmatprep.subr.mxu1 %v890_v0  ;;  %706 = vmatprep.subr.mxu0 %v890_v0 }
  0x44   :  { %678 = vmatpush3.msra.mxu1 %v170_v18  ;;  %707 = vmatpush3.msra.mxu0 %v267_v31  ;;  %v452_v18 = vld [vmem:[%s1166_s9 + $0x8] sm:$0xff] }
  0x45   :  { %679 = vmatprep.subr.mxu1 %v890_v0  ;;  %708 = vmatprep.subr.mxu0 %v890_v0 }
  0x46   :  { %680 = vmatpush3.msra.mxu1 %v169_v19  ;;  %709 = vmatpush3.msra.mxu0 %v266_v32  ;;  %v451_v19 = vld [vmem:[%s1166_s9] sm:$0xff] }
  0x47   :  { %719 = vmatprep.subr.mxu1 %v890_v0  ;;  %710 = vmatprep.subr.mxu0 %v890_v0 }
  0x48   :  { %711 = vmatpush3.msra.mxu0 %v265_v38 }
  0x49   :  { %712 = vmatprep.subr.mxu0 %v890_v0 }
  0x4a   :  { %713 = vmatpush3.msra.mxu0 %v264_v39 }
  0x4b   :  { %714 = vmatprep.subr.mxu0 %v890_v0 }
  0x4c   :  { %715 = vmatpush3.msra.mxu0 %v263_v40 }
  0x4d   :  { %754 = vmatprep.subr.mxu0 %v890_v0 }
  0xeb   :  { %v164_v34 = vpop.f32.mrf.mxu0 }
  0xec   :  { %v165_v35 = vadd.f32 %v564_v33, %v164_v34 }
  0xed   :  { %v648_v36 = vpop.f32.mrf.mxu0 }
  0xee   :  { %v168_v37 = vmax.f32 %v165_v35, 0.0 }
  0xf0   :  { %682 = vmatmul.mubr.f32.vlgmr.msra.gmra.mxu1 %v168_v37 }
  0xf1   :  { %751 = vmatprep.mubr.msk.f32.mxu1 %vm891_vm0, %v890_v0  ;;  %720 = vmatpush3.msra.mxu1 %v372_v41 }
  0xf2   :  { %721 = vmatprep.subr.mxu1 %v890_v0 }
  0xf3   :  { %722 = vmatpush3.msra.mxu1 %v371_v42 }
  0xf4   :  { %723 = vmatprep.subr.mxu1 %v890_v0 }
  0xf5   :  { %724 = vmatpush3.msra.mxu1 %v370_v43 }
  0xf6   :  { %725 = vmatprep.subr.mxu1 %v890_v0 }
  0xf7   :  { %726 = vmatpush3.msra.mxu1 %v369_v44 }
  0xf8   :  { %727 = vmatprep.subr.mxu1 %v890_v0 }
  0xf9   :  { %728 = vmatpush3.msra.mxu1 %v368_v45 }
  0xfa   :  { %729 = vmatprep.subr.mxu1 %v890_v0 }
  0xfb   :  { %730 = vmatpush3.msra.mxu1 %v367_v46 }
  0xfc   :  { %731 = vmatprep.subr.mxu1 %v890_v0 }
  0xfd   :  { %732 = vmatpush3.msra.mxu1 %v366_v47 }
  0xfe   :  { %733 = vmatprep.subr.mxu1 %v890_v0 }
  0xff   :  { %734 = vmatpush3.msra.mxu1 %v365_v48 }
 0x100   :  { %735 = vmatprep.subr.mxu1 %v890_v0 }
 0x101   :  { %736 = vmatpush3.msra.mxu1 %v364_v49 }
 0x102   :  { %737 = vmatprep.subr.mxu1 %v890_v0 }
 0x103   :  { %738 = vmatpush3.msra.mxu1 %v363_v50 }
 0x104   :  { %739 = vmatprep.subr.mxu1 %v890_v0 }
 0x105   :  { %740 = vmatpush3.msra.mxu1 %v362_v51 }
 0x106   :  { %741 = vmatprep.subr.mxu1 %v890_v0 }
 0x107   :  { %742 = vmatpush3.msra.mxu1 %v361_v52 }
 0x108   :  { %743 = vmatprep.subr.mxu1 %v890_v0 }
 0x109   :  { %744 = vmatpush3.msra.mxu1 %v360_v53 }
 0x10a   :  { %745 = vmatprep.subr.mxu1 %v890_v0 }
 0x10b   :  { %746 = vmatpush3.msra.mxu1 %v359_v59 }
 0x10c   :  { %747 = vmatprep.subr.mxu1 %v890_v0 }
 0x10d   :  { %748 = vmatpush3.msra.mxu1 %v358_v60 }
 0x10e   :  { %749 = vmatprep.subr.mxu1 %v890_v0 }
 0x10f   :  { %750 = vmatpush3.msra.mxu1 %v357_v61 }
 0x1b0   :  { %v258_v55 = vpop.f32.mrf.mxu1 }
 0x1b1   :  { %v259_v56 = vadd.f32 %v567_v54, %v258_v55 }
 0x1b2   :  { %v683_v57 = vpop.f32.mrf.mxu1 }
 0x1b3   :  { %v262_v58 = vmax.f32 %v259_v56, 0.0 }
 0x1b5   :  { %717 = vmatmul.mubr.f32.vlgmr.msra.gmra.mxu0 %v262_v58 }
 0x1b6   :  { %786 = vmatprep.mubr.msk.f32.mxu0 %vm891_vm0, %v890_v0  ;;  %755 = vmatpush3.msra.mxu0 %v466_v62 }
 0x1b7   :  { %756 = vmatprep.subr.mxu0 %v890_v0 }
 0x1b8   :  { %757 = vmatpush3.msra.mxu0 %v465_v63 }
 0x1b9   :  { %758 = vmatprep.subr.mxu0 %v890_v0 }
 0x1ba   :  { %759 = vmatpush3.msra.mxu0 %v464_v1 }
 0x1bb   :  { %760 = vmatprep.subr.mxu0 %v890_v0 }
 0x1bc   :  { %761 = vmatpush3.msra.mxu0 %v463_v2 }
 0x1bd   :  { %762 = vmatprep.subr.mxu0 %v890_v0 }
 0x1be   :  { %763 = vmatpush3.msra.mxu0 %v462_v3 }
 0x1bf   :  { %764 = vmatprep.subr.mxu0 %v890_v0 }
 0x1c0   :  { %765 = vmatpush3.msra.mxu0 %v461_v4 }
 0x1c1   :  { %766 = vmatprep.subr.mxu0 %v890_v0 }
 0x1c2   :  { %767 = vmatpush3.msra.mxu0 %v460_v5 }
 0x1c3   :  { %768 = vmatprep.subr.mxu0 %v890_v0 }
 0x1c4   :  { %769 = vmatpush3.msra.mxu0 %v459_v6 }
 0x1c5   :  { %770 = vmatprep.subr.mxu0 %v890_v0 }
 0x1c6   :  { %771 = vmatpush3.msra.mxu0 %v458_v7 }
 0x1c7   :  { %772 = vmatprep.subr.mxu0 %v890_v0 }
 0x1c8   :  { %773 = vmatpush3.msra.mxu0 %v457_v8 }
 0x1c9   :  { %774 = vmatprep.subr.mxu0 %v890_v0 }
 0x1ca   :  { %775 = vmatpush3.msra.mxu0 %v456_v9 }
 0x1cb   :  { %776 = vmatprep.subr.mxu0 %v890_v0 }
 0x1cc   :  { %777 = vmatpush3.msra.mxu0 %v455_v10 }
 0x1cd   :  { %778 = vmatprep.subr.mxu0 %v890_v0 }
 0x1ce   :  { %779 = vmatpush3.msra.mxu0 %v454_v11 }
 0x1cf   :  { %780 = vmatprep.subr.mxu0 %v890_v0 }
 0x1d0   :  { %781 = vmatpush3.msra.mxu0 %v453_v17 }
 0x1d1   :  { %782 = vmatprep.subr.mxu0 %v890_v0 }
 0x1d2   :  { %783 = vmatpush3.msra.mxu0 %v452_v18 }
 0x1d3   :  { %784 = vmatprep.subr.mxu0 %v890_v0 }
 0x1d4   :  { %785 = vmatpush3.msra.mxu0 %v451_v19 }
 0x275   :  { %v352_v13 = vpop.f32.mrf.mxu0 }
 0x276   :  { %v353_v14 = vadd.f32 %v568_v12, %v352_v13 }
 0x277   :  { %v718_v15 = vpop.f32.mrf.mxu0 }
 0x278   :  { %v356_v16 = vmax.f32 %v353_v14, 0.0 }
 0x27a   :  { %752 = vmatmul.mubr.f32.vlgmr.msra.gmra.mxu1 %v356_v16 }
 0x33a   :  { %v446_v21 = vpop.f32.mrf.mxu1 }
 0x33b   :  { %v447_v22 = vadd.f32 %v569_v20, %v446_v21 }
 0x33c   :  { %v753_v23 = vpop.f32.mrf.mxu1 }
 0x33d   :  { %v450_v24 = vmax.f32 %v447_v22, 0.0 }
 0x33f   :  { %787 = vmatmul.mubr.f32.vlgmr.msra.gmra.mxu0 %v450_v24 }
 0x3ff   :  { %v540_v26 = vpop.f32.mrf.mxu0 }
 0x400   :  { %v541_v0 = vadd.f32 %v570_v25, %v540_v26 }
 0x401   :  { %v788_v27 = vpop.f32.mrf.mxu0 }
 0x402   :  { %545 = vst.msk [vmem:[#allocation8] sm:$0xff] %vm544_vm3, %v541_v0 }
 0x403   :  { %550 = vsyncadd [#allocation4], 96  ;;  %s892_s9 = smov [#allocation8]  }
 0x404   :  { %s551_s1 = sshll.u32 %s892_s9, 4  ;;  %s552_s1 = int_to_ptr.vmem [resolvable:$true] %s551_s1 }
 0x405   :  { %s859_s7 = scalar_lea.vmem %s552_s1, 32  ;;  %s863_s8 = scalar_lea.vmem %s552_s1, 128 }
 0x406   :  { %p860_p1 = scmp.ne.s32.totalorder %s552_s1, %s859_s7  ;;  %p864_p2 = scmp.lt.s32.totalorder %s552_s1, %s552_s1 }
 0x407   :  { %p865_p3 = scmp.lt.s32.totalorder %s863_s8, %s859_s7 }
 0x409   :  { %p866_p4 = por %p865_p3, %p864_p2 }
 0x40b   :  { %p867_p5 = pnand %p866_p4, %p860_p1 }
 0x40d   :  { %870 = shalt.err (!%p867_p5)
}
 0x40e   :  { %s893_s14 = smov 32   ;;  %s894_s15 = smov 2  }
 0x40f   :  { %557 = dma.vmem_to_hbm [thread:$0]  %s552_s1, 32, %s1168_s11, [#allocation4], %s893_s14, %s893_s14, %s894_s15  }
 0x410   :  { %883 = dma.done.wait [#allocation4], 128  }
 0x411   :  { %884 = vsyncadd [#allocation4], 4294967168 }
 0x412   :  { %561 = vsyncpa [#allocation3], 1 }
 0x413   :  { %562 = vsyncpa [#allocation6], 1 }
 0x414   :  { %563 = vsyncpa [#allocation4], 1 }

// kernel: _mlp_forward_impl.1
= control target key start
LH: loop header
LB: loop body
LE: loop exit
PB: predicated region body
PF: predicated region fallthrough
CT: control target
= control target key end

     0   :  { %16 = vsyncpa [#allocation3], 0  ;;  %s1157_s0 = inlined_call_operand.vmem [shape: f32[2,10], index: 0, kind: input, shape index: {}]   ;;  %s1158_s1 = inlined_call_operand.hbm [shape: f32[10,128], index: 1, kind: input, shape index: {}]   ;;  %s1159_s2 = inlined_call_operand.vmem [shape: f32[1,128], index: 2, kind: input, shape index: {}]   ;;  %s1160_s3 = inlined_call_operand.vmem [shape: f32[128,128], index: 3, kind: input, shape index: {}]   ;;  %s1161_s4 = inlined_call_operand.vmem [shape: f32[1,128], index: 4, kind: input, shape index: {}]   ;;  %s1162_s5 = inlined_call_operand.hbm [shape: f32[128,128], index: 5, kind: input, shape index: {}]   ;;  %s1163_s6 = inlined_call_operand.vmem [shape: f32[1,128], index: 6, kind: input, shape index: {}]   ;;  %s1164_s7 = inlined_call_operand.hbm [shape: f32[128,128], index: 7, kind: input, shape index: {}]   ;;  %s1165_s8 = inlined_call_operand.vmem [shape: f32[1,128], index: 8, kind: input, shape index: {}]   ;;  %s1166_s9 = inlined_call_operand.vmem [shape: f32[128,2], index: 9, kind: input, shape index: {}]   ;;  %s1167_s10 = inlined_call_operand.vmem [shape: f32[1,2], index: 10, kind: input, shape index: {}]   ;;  %s1168_s11 = inlined_call_operand.hbm [shape: f32[2,2], index: 11, kind: output, shape index: {}]  }
   0x1   :  { %17 = vsyncpa [#allocation6], 0 }
   0x2   :  { %18 = vsyncpa [#allocation4], 0  ;;  %s885_s17 = smov [#allocation5]   ;;  %s886_s19 = smov [#allocation2]  }
   0x3   :  { %s44_s18 = sshll.u32 %s885_s17, 4  ;;  %s26_s20 = sshll.u32 %s886_s19, 4  ;;  %s45_s18 = int_to_ptr.vmem [resolvable:$true] %s44_s18  ;;  %s27_s20 = int_to_ptr.vmem [resolvable:$true] %s26_s20 }
   0x4   :  { %s807_s21 = scalar_lea.vmem %s45_s18, 2048  ;;  %p812_p1 = scmp.lt.s32.totalorder %s45_s18, %s45_s18 }
   0x5   :  { %p808_p0 = scmp.ne.s32.totalorder %s45_s18, %s807_s21  ;;  %p813_p2 = scmp.lt.s32.totalorder %s807_s21, %s807_s21 }
   0x7   :  { %p814_p3 = por %p813_p2, %p812_p1 }
   0x9   :  { %p815_p4 = pnand %p814_p3, %p808_p0 }
   0xb   :  { %818 = shalt.err (!%p815_p4)
}
   0xc   :  { %s887_s22 = smov 128   ;;  %s888_s23 = smov 8  }
   0xd   :  { %50 = dma.hbm_to_vmem [thread:$0]  %s1162_s5, 2048, %s45_s18, [#allocation6], %s887_s22, %s887_s22, %s888_s23  }
   0xe   :  { %s827_s26 = scalar_lea.vmem %s27_s20, 256  ;;  %p832_p6 = scmp.lt.s32.totalorder %s27_s20, %s27_s20 }
   0xf   :  { %p828_p5 = scmp.ne.s32.totalorder %s27_s20, %s827_s26  ;;  %p833_p7 = scmp.lt.s32.totalorder %s827_s26, %s827_s26 }
  0x11   :  { %p834_p8 = por %p833_p7, %p832_p6 }
  0x13   :  { %p835_p9 = pnand %p834_p8, %p828_p5 }
  0x15   :  { %838 = shalt.err (!%p835_p9)
}
  0x16   :  { %32 = dma.hbm_to_vmem [thread:$0]  %s1158_s1, 256, %s27_s20, [#allocation3], %s887_s22, %s887_s22, %s888_s23  }
  0x17   :  { %s889_s29 = smov [#allocation7]  }
  0x18   :  { %s58_s30 = sshll.u32 %s889_s29, 4  ;;  %s59_s30 = int_to_ptr.vmem [resolvable:$true] %s58_s30 }
  0x19   :  { %s847_s12 = scalar_lea.vmem %s59_s30, 2048  ;;  %p852_p11 = scmp.lt.s32.totalorder %s59_s30, %s59_s30 }
  0x1a   :  { %p848_p10 = scmp.ne.s32.totalorder %s59_s30, %s847_s12  ;;  %p853_p12 = scmp.lt.s32.totalorder %s847_s12, %s847_s12 }
  0x1c   :  { %p854_p13 = por %p853_p12, %p852_p11 }
  0x1e   :  { %p855_p0 = pnand %p854_p13, %p848_p10 }
  0x20   :  { %858 = shalt.err (!%p855_p0)
}
  0x21   :  { %64 = dma.hbm_to_vmem [thread:$0]  %s1164_s7, 2048, %s59_s30, [#allocation6], %s887_s22, %s887_s22, %s888_s23  }
  0x22   :  { %879 = dma.done.wait [#allocation3], 256  }
  0x23   :  { %880 = vsyncadd [#allocation3], 4294967040 }
  0x24   :  { %881 = dma.done.wait [#allocation6], 4096  }
  0x25   :  { %882 = vsyncadd [#allocation6], 4294963200  ;;  %v890_v0 = vmov 0.0   ;;  %vm891_vm0 = vmmov 0   ;;  %vm94_vm1 = vcmask 1041408   ;;  %v81_v2 = vld [vmem:[#allocation2] sm:$0xff] }
  0x26   :  { %642 = vmatprep.subr.mxu0 %v890_v0  ;;  %646 = vmatprep.mubr.msk.f32.mxu0 %vm891_vm0, %v890_v0  ;;  %v82_v1 = vld [vmem:[#allocation2 + $0x8] sm:$0x3]  ;;  %v80_v3 = vld [vmem:[%s1157_s0] sm:$0xff]  ;;  %vm90_vm2 = vcmask 80896   ;;  %v184_v4 = vld [vmem:[%s1160_s3 + $0x78] sm:$0xff]  ;;  %vm544_vm3 = vcmask 15360  }
  0x27   :  { %649 = vmatprep.subr.mxu1 %v890_v0  ;;  %681 = vmatprep.mubr.msk.f32.mxu1 %vm891_vm0, %v890_v0  ;;  %v183_v5 = vld [vmem:[%s1160_s3 + $0x70] sm:$0xff]  ;;  %v182_v6 = vld [vmem:[%s1160_s3 + $0x68] sm:$0xff]  ;;  %v181_v7 = vld [vmem:[%s1160_s3 + $0x60] sm:$0xff] }
  0x28   :  { %643 = vmatpush3.msk.msra.mxu0 %vm94_vm1, %v82_v1  ;;  %650 = vmatpush3.msra.mxu1 %v184_v4  ;;  %v180_v8 = vld [vmem:[%s1160_s3 + $0x58] sm:$0xff]  ;;  %v179_v9 = vld [vmem:[%s1160_s3 + $0x50] sm:$0xff]  ;;  %v178_v10 = vld [vmem:[%s1160_s3 + $0x48] sm:$0xff] }
  0x29   :  { %644 = vmatprep.subr.mxu0 %v890_v0  ;;  %651 = vmatprep.subr.mxu1 %v890_v0  ;;  %v177_v11 = vld [vmem:[%s1160_s3 + $0x40] sm:$0xff]  ;;  %v176_v12 = vld [vmem:[%s1160_s3 + $0x38] sm:$0xff]  ;;  %v175_v13 = vld [vmem:[%s1160_s3 + $0x30] sm:$0xff] }
  0x2a   :  { %645 = vmatpush3.msra.mxu0 %v81_v2  ;;  %652 = vmatpush3.msra.mxu1 %v183_v5  ;;  %v174_v14 = vld [vmem:[%s1160_s3 + $0x28] sm:$0xff]  ;;  %v173_v15 = vld [vmem:[%s1160_s3 + $0x20] sm:$0xff]  ;;  %v172_v16 = vld [vmem:[%s1160_s3 + $0x18] sm:$0xff] }
  0x2b   :  { %647 = vmatmul.mubr.msk.f32.vlgmr.msra.gmra.mxu0 %vm90_vm2, %v80_v3  ;;  %653 = vmatprep.subr.mxu1 %v890_v0  ;;  %v171_v17 = vld [vmem:[%s1160_s3 + $0x10] sm:$0xff]  ;;  %v170_v18 = vld [vmem:[%s1160_s3 + $0x8] sm:$0xff]  ;;  %v169_v19 = vld [vmem:[%s1160_s3] sm:$0xff] }
  0x2c   :  { %684 = vmatprep.subr.mxu0 %v890_v0  ;;  %654 = vmatpush3.msra.mxu1 %v182_v6  ;;  %v278_v20 = vld [vmem:[#allocation5 + $0x78] sm:$0xff]  ;;  %v277_v21 = vld [vmem:[#allocation5 + $0x70] sm:$0xff]  ;;  %v276_v22 = vld [vmem:[#allocation5 + $0x68] sm:$0xff] }
  0x2d   :  { %716 = vmatprep.mubr.msk.f32.mxu0 %vm891_vm0, %v890_v0  ;;  %655 = vmatprep.subr.mxu1 %v890_v0  ;;  %v275_v23 = vld [vmem:[#allocation5 + $0x60] sm:$0xff]  ;;  %v274_v24 = vld [vmem:[#allocation5 + $0x58] sm:$0xff]  ;;  %v273_v25 = vld [vmem:[#allocation5 + $0x50] sm:$0xff] }
  0x2e   :  { %656 = vmatpush3.msra.mxu1 %v181_v7  ;;  %685 = vmatpush3.msra.mxu0 %v278_v20  ;;  %v272_v26 = vld [vmem:[#allocation5 + $0x48] sm:$0xff]  ;;  %v271_v27 = vld [vmem:[#allocation5 + $0x40] sm:$0xff]  ;;  %v270_v28 = vld [vmem:[#allocation5 + $0x38] sm:$0xff] }
  0x2f   :  { %657 = vmatprep.subr.mxu1 %v890_v0  ;;  %686 = vmatprep.subr.mxu0 %v890_v0  ;;  %v269_v29 = vld [vmem:[#allocation5 + $0x30] sm:$0xff]  ;;  %v268_v30 = vld [vmem:[#allocation5 + $0x28] sm:$0xff]  ;;  %v267_v31 = vld [vmem:[#allocation5 + $0x20] sm:$0xff] }
  0x30   :  { %658 = vmatpush3.msra.mxu1 %v180_v8  ;;  %687 = vmatpush3.msra.mxu0 %v277_v21  ;;  %v266_v32 = vld [vmem:[#allocation5 + $0x18] sm:$0xff]  ;;  %v564_v33 = vld [vmem:[%s1159_s2] ss:$0 sm:$0xff]  ;;  %v264_v39 = vld [vmem:[#allocation5 + $0x8] sm:$0xff] }
  0x31   :  { %659 = vmatprep.subr.mxu1 %v890_v0  ;;  %688 = vmatprep.subr.mxu0 %v890_v0  ;;  %v265_v38 = vld [vmem:[#allocation5 + $0x10] sm:$0xff]  ;;  %v263_v40 = vld [vmem:[#allocation5] sm:$0xff]  ;;  %v372_v41 = vld [vmem:[#allocation7 + $0x78] sm:$0xff] }
  0x32   :  { %660 = vmatpush3.msra.mxu1 %v179_v9  ;;  %689 = vmatpush3.msra.mxu0 %v276_v22  ;;  %v371_v42 = vld [vmem:[#allocation7 + $0x70] sm:$0xff]  ;;  %v370_v43 = vld [vmem:[#allocation7 + $0x68] sm:$0xff]  ;;  %v369_v44 = vld [vmem:[#allocation7 + $0x60] sm:$0xff] }
  0x33   :  { %661 = vmatprep.subr.mxu1 %v890_v0  ;;  %690 = vmatprep.subr.mxu0 %v890_v0  ;;  %v368_v45 = vld [vmem:[#allocation7 + $0x58] sm:$0xff]  ;;  %v367_v46 = vld [vmem:[#allocation7 + $0x50] sm:$0xff]  ;;  %v366_v47 = vld [vmem:[#allocation7 + $0x48] sm:$0xff] }
  0x34   :  { %662 = vmatpush3.msra.mxu1 %v178_v10  ;;  %691 = vmatpush3.msra.mxu0 %v275_v23  ;;  %v365_v48 = vld [vmem:[#allocation7 + $0x40] sm:$0xff]  ;;  %v364_v49 = vld [vmem:[#allocation7 + $0x38] sm:$0xff]  ;;  %v363_v50 = vld [vmem:[#allocation7 + $0x30] sm:$0xff] }
  0x35   :  { %663 = vmatprep.subr.mxu1 %v890_v0  ;;  %692 = vmatprep.subr.mxu0 %v890_v0  ;;  %v362_v51 = vld [vmem:[#allocation7 + $0x28] sm:$0xff]  ;;  %v361_v52 = vld [vmem:[#allocation7 + $0x20] sm:$0xff]  ;;  %v360_v53 = vld [vmem:[#allocation7 + $0x18] sm:$0xff] }
  0x36   :  { %664 = vmatpush3.msra.mxu1 %v177_v11  ;;  %693 = vmatpush3.msra.mxu0 %v274_v24  ;;  %v567_v54 = vld [vmem:[%s1161_s4] ss:$0 sm:$0xff]  ;;  %v358_v60 = vld [vmem:[#allocation7 + $0x8] sm:$0xff]  ;;  %v357_v61 = vld [vmem:[#allocation7] sm:$0xff] }
  0x37   :  { %665 = vmatprep.subr.mxu1 %v890_v0  ;;  %694 = vmatprep.subr.mxu0 %v890_v0  ;;  %v359_v59 = vld [vmem:[#allocation7 + $0x10] sm:$0xff]  ;;  %v466_v62 = vld [vmem:[%s1166_s9 + $0x78] sm:$0xff]  ;;  %v465_v63 = vld [vmem:[%s1166_s9 + $0x70] sm:$0xff] }
  0x38   :  { %666 = vmatpush3.msra.mxu1 %v176_v12  ;;  %695 = vmatpush3.msra.mxu0 %v273_v25  ;;  %v464_v1 = vld [vmem:[%s1166_s9 + $0x68] sm:$0xff]  ;;  %v463_v2 = vld [vmem:[%s1166_s9 + $0x60] sm:$0xff]  ;;  %v462_v3 = vld [vmem:[%s1166_s9 + $0x58] sm:$0xff] }
  0x39   :  { %667 = vmatprep.subr.mxu1 %v890_v0  ;;  %696 = vmatprep.subr.mxu0 %v890_v0  ;;  %v461_v4 = vld [vmem:[%s1166_s9 + $0x50] sm:$0xff]  ;;  %v460_v5 = vld [vmem:[%s1166_s9 + $0x48] sm:$0xff]  ;;  %v459_v6 = vld [vmem:[%s1166_s9 + $0x40] sm:$0xff] }
  0x3a   :  { %668 = vmatpush3.msra.mxu1 %v175_v13  ;;  %697 = vmatpush3.msra.mxu0 %v272_v26  ;;  %v458_v7 = vld [vmem:[%s1166_s9 + $0x38] sm:$0xff]  ;;  %v457_v8 = vld [vmem:[%s1166_s9 + $0x30] sm:$0xff]  ;;  %v456_v9 = vld [vmem:[%s1166_s9 + $0x28] sm:$0xff] }
  0x3b   :  { %669 = vmatprep.subr.mxu1 %v890_v0  ;;  %698 = vmatprep.subr.mxu0 %v890_v0  ;;  %v455_v10 = vld [vmem:[%s1166_s9 + $0x20] sm:$0xff]  ;;  %v454_v11 = vld [vmem:[%s1166_s9 + $0x18] sm:$0xff] }
  0x3c   :  { %670 = vmatpush3.msra.mxu1 %v174_v14  ;;  %699 = vmatpush3.msra.mxu0 %v271_v27  ;;  %v568_v12 = vld [vmem:[%s1163_s6] ss:$0 sm:$0xff] }
  0x3d   :  { %671 = vmatprep.subr.mxu1 %v890_v0  ;;  %700 = vmatprep.subr.mxu0 %v890_v0  ;;  %v569_v20 = vld [vmem:[%s1165_s8] ss:$0 sm:$0xff] }
  0x3e   :  { %672 = vmatpush3.msra.mxu1 %v173_v15  ;;  %701 = vmatpush3.msra.mxu0 %v270_v28  ;;  %v570_v25 = vld [vmem:[%s1167_s10] ss:$0 sm:$0xff] }
  0x3f   :  { %673 = vmatprep.subr.mxu1 %v890_v0  ;;  %702 = vmatprep.subr.mxu0 %v890_v0 }
  0x40   :  { %674 = vmatpush3.msra.mxu1 %v172_v16  ;;  %703 = vmatpush3.msra.mxu0 %v269_v29 }
  0x41   :  { %675 = vmatprep.subr.mxu1 %v890_v0  ;;  %704 = vmatprep.subr.mxu0 %v890_v0 }
  0x42   :  { %676 = vmatpush3.msra.mxu1 %v171_v17  ;;  %705 = vmatpush3.msra.mxu0 %v268_v30  ;;  %v453_v17 = vld [vmem:[%s1166_s9 + $0x10] sm:$0xff] }
  0x43   :  { %677 = vmatprep.subr.mxu1 %v890_v0  ;;  %706 = vmatprep.subr.mxu0 %v890_v0 }
  0x44   :  { %678 = vmatpush3.msra.mxu1 %v170_v18  ;;  %707 = vmatpush3.msra.mxu0 %v267_v31  ;;  %v452_v18 = vld [vmem:[%s1166_s9 + $0x8] sm:$0xff] }
  0x45   :  { %679 = vmatprep.subr.mxu1 %v890_v0  ;;  %708 = vmatprep.subr.mxu0 %v890_v0 }
  0x46   :  { %680 = vmatpush3.msra.mxu1 %v169_v19  ;;  %709 = vmatpush3.msra.mxu0 %v266_v32  ;;  %v451_v19 = vld [vmem:[%s1166_s9] sm:$0xff] }
  0x47   :  { %719 = vmatprep.subr.mxu1 %v890_v0  ;;  %710 = vmatprep.subr.mxu0 %v890_v0 }
  0x48   :  { %711 = vmatpush3.msra.mxu0 %v265_v38 }
  0x49   :  { %712 = vmatprep.subr.mxu0 %v890_v0 }
  0x4a   :  { %713 = vmatpush3.msra.mxu0 %v264_v39 }
  0x4b   :  { %714 = vmatprep.subr.mxu0 %v890_v0 }
  0x4c   :  { %715 = vmatpush3.msra.mxu0 %v263_v40 }
  0x4d   :  { %754 = vmatprep.subr.mxu0 %v890_v0 }
  0xeb   :  { %v164_v34 = vpop.f32.mrf.mxu0 }
  0xec   :  { %v165_v35 = vadd.f32 %v564_v33, %v164_v34 }
  0xed   :  { %v648_v36 = vpop.f32.mrf.mxu0 }
  0xee   :  { %v168_v37 = vmax.f32 %v165_v35, 0.0 }
  0xf0   :  { %682 = vmatmul.mubr.f32.vlgmr.msra.gmra.mxu1 %v168_v37 }
  0xf1   :  { %751 = vmatprep.mubr.msk.f32.mxu1 %vm891_vm0, %v890_v0  ;;  %720 = vmatpush3.msra.mxu1 %v372_v41 }
  0xf2   :  { %721 = vmatprep.subr.mxu1 %v890_v0 }
  0xf3   :  { %722 = vmatpush3.msra.mxu1 %v371_v42 }
  0xf4   :  { %723 = vmatprep.subr.mxu1 %v890_v0 }
  0xf5   :  { %724 = vmatpush3.msra.mxu1 %v370_v43 }
  0xf6   :  { %725 = vmatprep.subr.mxu1 %v890_v0 }
  0xf7   :  { %726 = vmatpush3.msra.mxu1 %v369_v44 }
  0xf8   :  { %727 = vmatprep.subr.mxu1 %v890_v0 }
  0xf9   :  { %728 = vmatpush3.msra.mxu1 %v368_v45 }
  0xfa   :  { %729 = vmatprep.subr.mxu1 %v890_v0 }
  0xfb   :  { %730 = vmatpush3.msra.mxu1 %v367_v46 }
  0xfc   :  { %731 = vmatprep.subr.mxu1 %v890_v0 }
  0xfd   :  { %732 = vmatpush3.msra.mxu1 %v366_v47 }
  0xfe   :  { %733 = vmatprep.subr.mxu1 %v890_v0 }
  0xff   :  { %734 = vmatpush3.msra.mxu1 %v365_v48 }
 0x100   :  { %735 = vmatprep.subr.mxu1 %v890_v0 }
 0x101   :  { %736 = vmatpush3.msra.mxu1 %v364_v49 }
 0x102   :  { %737 = vmatprep.subr.mxu1 %v890_v0 }
 0x103   :  { %738 = vmatpush3.msra.mxu1 %v363_v50 }
 0x104   :  { %739 = vmatprep.subr.mxu1 %v890_v0 }
 0x105   :  { %740 = vmatpush3.msra.mxu1 %v362_v51 }
 0x106   :  { %741 = vmatprep.subr.mxu1 %v890_v0 }
 0x107   :  { %742 = vmatpush3.msra.mxu1 %v361_v52 }
 0x108   :  { %743 = vmatprep.subr.mxu1 %v890_v0 }
 0x109   :  { %744 = vmatpush3.msra.mxu1 %v360_v53 }
 0x10a   :  { %745 = vmatprep.subr.mxu1 %v890_v0 }
 0x10b   :  { %746 = vmatpush3.msra.mxu1 %v359_v59 }
 0x10c   :  { %747 = vmatprep.subr.mxu1 %v890_v0 }
 0x10d   :  { %748 = vmatpush3.msra.mxu1 %v358_v60 }
 0x10e   :  { %749 = vmatprep.subr.mxu1 %v890_v0 }
 0x10f   :  { %750 = vmatpush3.msra.mxu1 %v357_v61 }
 0x1b0   :  { %v258_v55 = vpop.f32.mrf.mxu1 }
 0x1b1   :  { %v259_v56 = vadd.f32 %v567_v54, %v258_v55 }
 0x1b2   :  { %v683_v57 = vpop.f32.mrf.mxu1 }
 0x1b3   :  { %v262_v58 = vmax.f32 %v259_v56, 0.0 }
 0x1b5   :  { %717 = vmatmul.mubr.f32.vlgmr.msra.gmra.mxu0 %v262_v58 }
 0x1b6   :  { %786 = vmatprep.mubr.msk.f32.mxu0 %vm891_vm0, %v890_v0  ;;  %755 = vmatpush3.msra.mxu0 %v466_v62 }
 0x1b7   :  { %756 = vmatprep.subr.mxu0 %v890_v0 }
 0x1b8   :  { %757 = vmatpush3.msra.mxu0 %v465_v63 }
 0x1b9   :  { %758 = vmatprep.subr.mxu0 %v890_v0 }
 0x1ba   :  { %759 = vmatpush3.msra.mxu0 %v464_v1 }
 0x1bb   :  { %760 = vmatprep.subr.mxu0 %v890_v0 }
 0x1bc   :  { %761 = vmatpush3.msra.mxu0 %v463_v2 }
 0x1bd   :  { %762 = vmatprep.subr.mxu0 %v890_v0 }
 0x1be   :  { %763 = vmatpush3.msra.mxu0 %v462_v3 }
 0x1bf   :  { %764 = vmatprep.subr.mxu0 %v890_v0 }
 0x1c0   :  { %765 = vmatpush3.msra.mxu0 %v461_v4 }
 0x1c1   :  { %766 = vmatprep.subr.mxu0 %v890_v0 }
 0x1c2   :  { %767 = vmatpush3.msra.mxu0 %v460_v5 }
 0x1c3   :  { %768 = vmatprep.subr.mxu0 %v890_v0 }
 0x1c4   :  { %769 = vmatpush3.msra.mxu0 %v459_v6 }
 0x1c5   :  { %770 = vmatprep.subr.mxu0 %v890_v0 }
 0x1c6   :  { %771 = vmatpush3.msra.mxu0 %v458_v7 }
 0x1c7   :  { %772 = vmatprep.subr.mxu0 %v890_v0 }
 0x1c8   :  { %773 = vmatpush3.msra.mxu0 %v457_v8 }
 0x1c9   :  { %774 = vmatprep.subr.mxu0 %v890_v0 }
 0x1ca   :  { %775 = vmatpush3.msra.mxu0 %v456_v9 }
 0x1cb   :  { %776 = vmatprep.subr.mxu0 %v890_v0 }
 0x1cc   :  { %777 = vmatpush3.msra.mxu0 %v455_v10 }
 0x1cd   :  { %778 = vmatprep.subr.mxu0 %v890_v0 }
 0x1ce   :  { %779 = vmatpush3.msra.mxu0 %v454_v11 }
 0x1cf   :  { %780 = vmatprep.subr.mxu0 %v890_v0 }
 0x1d0   :  { %781 = vmatpush3.msra.mxu0 %v453_v17 }
 0x1d1   :  { %782 = vmatprep.subr.mxu0 %v890_v0 }
 0x1d2   :  { %783 = vmatpush3.msra.mxu0 %v452_v18 }
 0x1d3   :  { %784 = vmatprep.subr.mxu0 %v890_v0 }
 0x1d4   :  { %785 = vmatpush3.msra.mxu0 %v451_v19 }
 0x275   :  { %v352_v13 = vpop.f32.mrf.mxu0 }
 0x276   :  { %v353_v14 = vadd.f32 %v568_v12, %v352_v13 }
 0x277   :  { %v718_v15 = vpop.f32.mrf.mxu0 }
 0x278   :  { %v356_v16 = vmax.f32 %v353_v14, 0.0 }
 0x27a   :  { %752 = vmatmul.mubr.f32.vlgmr.msra.gmra.mxu1 %v356_v16 }
 0x33a   :  { %v446_v21 = vpop.f32.mrf.mxu1 }
 0x33b   :  { %v447_v22 = vadd.f32 %v569_v20, %v446_v21 }
 0x33c   :  { %v753_v23 = vpop.f32.mrf.mxu1 }
 0x33d   :  { %v450_v24 = vmax.f32 %v447_v22, 0.0 }
 0x33f   :  { %787 = vmatmul.mubr.f32.vlgmr.msra.gmra.mxu0 %v450_v24 }
 0x3ff   :  { %v540_v26 = vpop.f32.mrf.mxu0 }
 0x400   :  { %v541_v0 = vadd.f32 %v570_v25, %v540_v26 }
 0x401   :  { %v788_v27 = vpop.f32.mrf.mxu0 }
 0x402   :  { %545 = vst.msk [vmem:[#allocation8] sm:$0xff] %vm544_vm3, %v541_v0 }
 0x403   :  { %550 = vsyncadd [#allocation4], 96  ;;  %s892_s9 = smov [#allocation8]  }
 0x404   :  { %s551_s1 = sshll.u32 %s892_s9, 4  ;;  %s552_s1 = int_to_ptr.vmem [resolvable:$true] %s551_s1 }
 0x405   :  { %s859_s7 = scalar_lea.vmem %s552_s1, 32  ;;  %s863_s8 = scalar_lea.vmem %s552_s1, 128 }
 0x406   :  { %p860_p1 = scmp.ne.s32.totalorder %s552_s1, %s859_s7  ;;  %p864_p2 = scmp.lt.s32.totalorder %s552_s1, %s552_s1 }
 0x407   :  { %p865_p3 = scmp.lt.s32.totalorder %s863_s8, %s859_s7 }
 0x409   :  { %p866_p4 = por %p865_p3, %p864_p2 }
 0x40b   :  { %p867_p5 = pnand %p866_p4, %p860_p1 }
 0x40d   :  { %870 = shalt.err (!%p867_p5)
}
 0x40e   :  { %s893_s14 = smov 32   ;;  %s894_s15 = smov 2  }
 0x40f   :  { %557 = dma.vmem_to_hbm [thread:$0]  %s552_s1, 32, %s1168_s11, [#allocation4], %s893_s14, %s893_s14, %s894_s15  }
 0x410   :  { %883 = dma.done.wait [#allocation4], 128  }
 0x411   :  { %884 = vsyncadd [#allocation4], 4294967168 }
 0x412   :  { %561 = vsyncpa [#allocation3], 1 }
 0x413   :  { %562 = vsyncpa [#allocation6], 1 }
 0x414   :  { %563 = vsyncpa [#allocation4], 1 }

</bundles_post_ra>
